<compile_context>
chip_gen: v6e
topology: v6e:2x2x1
jax: 0.10.0
libtpu: 0.0.40
codegen_flags: <defaults>
</compile_context>

<pallas_src>
import jax
import jax.numpy as jnp
from jax.experimental import pallas as pl
from jax.experimental.pallas import tpu as pltpu

_LANE = 128
_MIN_GRID_STEPS = 8                 # keep enough steps for DMA pipelining / 2 TCs on v7x
_BLOCK_BYTES = 2 * 1024 * 1024      # target x-block size (~1-4 MiB sweet spot)


def _vmem_limit_bytes(buffer_bytes):
    # actual footprint + headroom for kernel temporaries; floor 16 MiB, cap 64 MiB (v7x physical)
    return int(min(64 << 20, max(int(buffer_bytes) + (8 << 20), 16 << 20)))


# --------------------------------------------------------------------------- fused single-pass
def _se_fused_kernel(lens_ref, x_ref, w1t_ref, w2t_ref, out_ref):
    # lens_ref : (B_pad, 1) i32, fully resident (lengths pre-clamped to [1, T])
    # x_ref    : (BB, C, Tp) f32 current batch block
    # w1t_ref  : (C, H) f32 resident      w2t_ref : (H, C) f32 resident
    # out_ref  : (BB, C, Tp) f32
    bb, _, tp = x_ref.shape
    b0 = pl.program_id(0) * bb

    lens = lens_ref[pl.ds(b0, bb), :]                              # (BB, 1) i32
    inv_len = 1.0 / lens.astype(jnp.float32)                       # (BB, 1)

    # masked sum over time as one MXU batched matvec (0/1 mask; exact 1/len scale applied after)
    t_idx = jax.lax.broadcasted_iota(jnp.int32, (bb, 1, tp), 2)
    mvec = jnp.where(t_idx < lens[:, :, None], 1.0, 0.0)           # (BB, 1, Tp)
    y_sum = jnp.einsum("bot,bct->boc", mvec, x_ref[...],
                       preferred_element_type=jnp.float32)[:, 0, :]  # (BB, C)
    y = y_sum * inv_len                                            # masked mean, (BB, C)

    # squeeze-excite stack: Linear(C->H, no bias) -> ReLU -> Linear(H->C, no bias) -> Sigmoid
    h = jnp.maximum(jnp.dot(y, w1t_ref[...], preferred_element_type=jnp.float32), 0.0)
    s = jax.nn.sigmoid(jnp.dot(h, w2t_ref[...], preferred_element_type=jnp.float32))  # (BB, C)

    # gate: re-index x_ref (keeps vreg pressure flat at MiB-scale tiles), lane-dense store on Tp
    out_ref[...] = x_ref[...] * s[:, :, None]


# ---------------------------------------------------------------- two-phase (T-tiled) fallback
def _se_reduce_fc_kernel(lens_ref, x_ref, w1t_ref, w2t_ref, s_ref, acc_ref):
    # grid = (B_blocks, T_blocks); axis 1 is the time reduction ("arbitrary", last).
    # acc_ref : (BB, 1, C) f32 scratch, persists across the T axis.
    bb, _, tt = x_ref.shape
    ti = pl.program_id(1)

    @pl.when(ti == 0)
    def _():
        acc_ref[...] = jnp.zeros_like(acc_ref)

    b0 = pl.program_id(0) * bb
    lens = lens_ref[pl.ds(b0, bb), :]                               # (BB, 1) i32
    t_idx = jax.lax.broadcasted_iota(jnp.int32, (bb, 1, tt), 2) + ti * tt
    mvec = jnp.where(t_idx < lens[:, :, None], 1.0, 0.0)            # (BB, 1, TT)
    acc_ref[...] += jnp.einsum("bot,bct->boc", mvec, x_ref[...],
                               preferred_element_type=jnp.float32)  # (BB, 1, C)

    @pl.when(ti == pl.num_programs(1) - 1)
    def _():
        y = acc_ref[...][:, 0, :] * (1.0 / lens.astype(jnp.float32))   # masked mean, (BB, C)
        h = jnp.maximum(jnp.dot(y, w1t_ref[...], preferred_element_type=jnp.float32), 0.0)
        s = jax.nn.sigmoid(jnp.dot(h, w2t_ref[...], preferred_element_type=jnp.float32))
        s_ref[...] = s[:, :, None]                                   # (BB, C, 1)


def _se_gate_kernel(x_ref, s_ref, out_ref):
    # x_ref/out_ref: (BB, C, TT); s_ref: (BB, C, 1) -> lane-broadcast multiply, lane-dense store
    out_ref[...] = x_ref[...] * s_ref[...]


# ------------------------------------------------------------------------------------- wrapper
def se_block(x, length, w1, w2, *, block_bytes=_BLOCK_BYTES):
    """x: (B, C, T) f32, length: (B,) int, w1: (H, C), w2: (C, H) (PyTorch nn.Linear layout)."""
    b, c, t = x.shape
    hdim = w1.shape[0]
    itemsize = 4  # f32

    # lengths clamped to [1, T]; keep as a (B, 1) column so it can live resident in VMEM
    lens = jnp.clip(length.astype(jnp.int32), 1, t).reshape(b, 1)

    # pre-transpose weights (cheap glue) so the kernel does plain row-major matmuls
    w1t = jnp.transpose(w1)   # (C, H)
    w2t = jnp.transpose(w2)   # (H, C)

    tp = pl.cdiv(t, _LANE) * _LANE          # lane-dense T
    row_bytes = c * tp * itemsize

    if row_bytes <= block_bytes:
        # -------------------- single-pass: one (BB, C, Tp) block per grid step --------------------
        bb = max(1, min(b, block_bytes // row_bytes))
        while bb > 1 and pl.cdiv(b, bb) < _MIN_GRID_STEPS:
            bb = max(1, bb // 2)            # prefer enough grid steps for pipelining / 2 TCs
        b_pad = pl.cdiv(b, bb) * bb

        x_p = x if (b_pad == b and tp == t) else jnp.pad(x, ((0, b_pad - b), (0, 0), (0, tp - t)))
        lens_p = lens if b_pad == b else jnp.pad(lens, ((0, b_pad - b), (0, 0)), constant_values=1)

        buf_bytes = (4 * bb * c * tp                      # x + out, double-buffered
                     + 2 * (b_pad + c * hdim + hdim * c)  # resident lens + weights
                     ) * itemsize
        out_p = pl.pallas_call(
            _se_fused_kernel,
            out_shape=jax.ShapeDtypeStruct((b_pad, c, tp), x.dtype),
            grid_spec=pltpu.PrefetchScalarGridSpec(
                num_scalar_prefetch=0,
                grid=(b_pad // bb,),
                in_specs=[
                    pl.BlockSpec((b_pad, 1), lambda i: (0, 0)),        # lens: resident
                    pl.BlockSpec((bb, c, tp), lambda i: (i, 0, 0)),    # x: one batch block
                    pl.BlockSpec((c, hdim), lambda i: (0, 0)),         # w1t: resident
                    pl.BlockSpec((hdim, c), lambda i: (0, 0)),         # w2t: resident
                ],
                out_specs=pl.BlockSpec((bb, c, tp), lambda i: (i, 0, 0)),
            ),
            compiler_params=pltpu.CompilerParams(
                dimension_semantics=("parallel",),
                vmem_limit_bytes=_vmem_limit_bytes(buf_bytes),
            ),
        )(lens_p, x_p, w1t, w2t)
        return out_p[:b, :, :t]

    # ----------- two-phase fallback: a single (C, Tp) row exceeds the per-block budget -----------
    bb = 1
    tt = max(_LANE, (block_bytes // (c * itemsize)) // _LANE * _LANE)
    tp2 = pl.cdiv(t, tt) * tt
    x_p = x if tp2 == t else jnp.pad(x, ((0, 0), (0, 0), (0, tp2 - t)))
    nt = tp2 // tt

    # pass 1: T-tiled masked-sum reduction + FC/sigmoid -> s (B, C, 1)
    buf1 = (2 * bb * c * tt + 2 * bb * c + b + 2 * (c * hdim + hdim * c) + bb * c) * itemsize
    s = pl.pallas_call(
        _se_reduce_fc_kernel,
        out_shape=jax.ShapeDtypeStruct((b, c, 1), jnp.float32),
        grid_spec=pltpu.PrefetchScalarGridSpec(
            num_scalar_prefetch=0,
            grid=(b // bb, nt),                                       # reduction axis last
            in_specs=[
                pl.BlockSpec((b, 1), lambda i, j: (0, 0)),            # lens: resident
                pl.BlockSpec((bb, c, tt), lambda i, j: (i, 0, j)),    # x: T tile
                pl.BlockSpec((c, hdim), lambda i, j: (0, 0)),
                pl.BlockSpec((hdim, c), lambda i, j: (0, 0)),
            ],
            out_specs=pl.BlockSpec((bb, c, 1), lambda i, j: (i, 0, 0)),
            scratch_shapes=[pltpu.VMEM((bb, 1, c), jnp.float32)],
        ),
        compiler_params=pltpu.CompilerParams(
            dimension_semantics=("parallel", "arbitrary"),
            vmem_limit_bytes=_vmem_limit_bytes(buf1),
        ),
    )(lens, x_p, w1t, w2t)

    # pass 2: T-tiled gating pass (re-reads x)
    buf2 = (4 * bb * c * tt + 2 * bb * c) * itemsize
    out_p = pl.pallas_call(
        _se_gate_kernel,
        out_shape=jax.ShapeDtypeStruct((b, c, tp2), x.dtype),
        grid_spec=pltpu.PrefetchScalarGridSpec(
            num_scalar_prefetch=0,
            grid=(b // bb, nt),
            in_specs=[
                pl.BlockSpec((bb, c, tt), lambda i, j: (i, 0, j)),
                pl.BlockSpec((bb, c, 1), lambda i, j: (i, 0, 0)),
            ],
            out_specs=pl.BlockSpec((bb, c, tt), lambda i, j: (i, 0, j)),
        ),
        compiler_params=pltpu.CompilerParams(
            dimension_semantics=("parallel", "parallel"),
            vmem_limit_bytes=_vmem_limit_bytes(buf2),
        ),
    )(x_p, s)
    return out_p[:, :, :t]


def se_block_reference(x, length, w1, w2):
    """Pure-JAX reference mirroring the PyTorch forward (lengths clamped to [1, T])."""
    _, _, t = x.shape
    lens = jnp.clip(length.astype(jnp.int32), 1, t)
    mask = jnp.arange(t)[None, None, :] < lens[:, None, None]
    y = jnp.sum(jnp.where(mask, x, 0.0), axis=2) / lens.astype(jnp.float32)[:, None]
    h = jnp.maximum(y @ w1.T, 0.0)
    s = jax.nn.sigmoid(h @ w2.T)
    return x * s[:, :, None]


if __name__ == "__main__":
    # shapes consistent with the module: channel=64, r=16 -> hidden=4; T deliberately NOT a
    # multiple of 128 to exercise the lane-padding guard.
    B, C, T, R = 2, 64, 100, 16
    H = C // R

    key = jax.random.PRNGKey(0)
    kx, k1, k2, kx2 = jax.random.split(key, 4)

    x = jax.random.normal(kx, (B, C, T), dtype=jnp.float32)
    length = jnp.array([100, 57], dtype=jnp.int32)            # valid lengths per batch element

    w1 = 0.1 * jax.random.normal(k1, (H, C), dtype=jnp.float32)   # nn.Linear(C, H, bias=False).weight
    w2 = 0.1 * jax.random.normal(k2, (C, H), dtype=jnp.float32)   # nn.Linear(H, C, bias=False).weight

    # tolerance covers MXU pass-count / summation-order differences vs the pure-XLA reference
    TOL = 1e-4

    # --- default (fused single-pass) path ---
    out = jax.block_until_ready(se_block(x, length, w1, w2))
    ref = se_block_reference(x, length, w1, w2)
    assert out.shape == (B, C, T)
    assert jnp.allclose(out, ref, atol=TOL, rtol=TOL), "mismatch vs reference (single-pass)"

    # --- force the two-phase T-tiled fallback with a tiny block budget ---
    T2 = 300
    x2 = jax.random.normal(kx2, (B, C, T2), dtype=jnp.float32)
    length2 = jnp.array([300, 123], dtype=jnp.int32)
    out2 = jax.block_until_ready(se_block(x2, length2, w1, w2, block_bytes=32 * 1024))
    ref2 = se_block_reference(x2, length2, w1, w2)
    assert out2.shape == (B, C, T2)
    assert jnp.allclose(out2, ref2, atol=TOL, rtol=TOL), "mismatch vs reference (two-phase)"

    print("KERNEL_OK")
</pallas_src>

<mosaic_0001>
module attributes {stable_mosaic.version = 11 : i64} {
  func.func @_se_fused_kernel(%arg0: i32, %arg1: memref<2x1xi32, #tpu.memory_space<vmem>>, %arg2: memref<1x64x128xf32, #tpu.memory_space<vmem>>, %arg3: memref<64x4xf32, #tpu.memory_space<vmem>>, %arg4: memref<4x64xf32, #tpu.memory_space<vmem>>, %arg5: memref<1x64x128xf32, #tpu.memory_space<vmem>>) attributes {dimension_semantics = [#tpu.dimension_semantics<parallel>], iteration_bounds = array<i64: 2>, scalar_prefetch = 0 : i64, scratch_operands = 0 : i64, tpu.core_type = #tpu.core_type<tc>, window_params = [{pipeline_mode = #tpu.pipeline_mode<synchronous>, transform_indices = @transform_0, window_bounds = array<i64: 2, 1>}, {transform_indices = @transform_1, window_bounds = array<i64: 1, 64, 128>}, {pipeline_mode = #tpu.pipeline_mode<synchronous>, transform_indices = @transform_2, window_bounds = array<i64: 64, 4>}, {pipeline_mode = #tpu.pipeline_mode<synchronous>, transform_indices = @transform_3, window_bounds = array<i64: 4, 64>}, {transform_indices = @transform_4, window_bounds = array<i64: 1, 64, 128>}]} {
    %c1_i32 = arith.constant 1 : i32
    %0 = arith.muli %arg0, %c1_i32 : i32
    %1 = arith.index_cast %0 : i32 to index
    %c0 = arith.constant 0 : index
    %2 = vector.load %arg1[%1, %c0] : memref<2x1xi32, #tpu.memory_space<vmem>>, vector<1x1xi32>
    %3 = arith.sitofp %2 : vector<1x1xi32> to vector<1x1xf32>
    %cst = arith.constant 1.000000e+00 : f32
    %4 = vector.broadcast %cst : f32 to vector<1x1xf32>
    %5 = arith.divf %4, %3 : vector<1x1xf32>
    %6 = tpu.iota {dimensions = array<i32: 2>} : vector<1x1x128xi32>
    %7 = vector.shape_cast %2 : vector<1x1xi32> to vector<1x1x1xi32>
    %8 = vector.broadcast %7 : vector<1x1x1xi32> to vector<1x1x128xi32>
    %9 = arith.cmpi slt, %6, %8 : vector<1x1x128xi32>
    %cst_0 = arith.constant 1.000000e+00 : f32
    %cst_1 = arith.constant 0.000000e+00 : f32
    %10 = vector.broadcast %cst_0 : f32 to vector<1x1x128xf32>
    %11 = vector.broadcast %cst_1 : f32 to vector<1x1x128xf32>
    %12 = arith.select %9, %10, %11 : vector<1x1x128xi1>, vector<1x1x128xf32>
    %c0_2 = arith.constant 0 : index
    %c0_3 = arith.constant 0 : index
    %c0_4 = arith.constant 0 : index
    %13 = vector.load %arg2[%c0_2, %c0_3, %c0_4] : memref<1x64x128xf32, #tpu.memory_space<vmem>>, vector<1x64x128xf32>
    "tpu.trace_start"() <{level = 10 : i32, message = "bot,bct->boc"}> : () -> ()
    %cst_5 = arith.constant dense<0.000000e+00> : vector<1x1x64xf32>
    %14 = tpu.matmul %12, %13, %cst_5 {dimension_numbers = #tpu.dot_dimension_numbers<[2], [2], [1], [1], [0, 0, 0, 1, 1, 1], [0], [0]>} : vector<1x1x128xf32>, vector<1x64x128xf32>, vector<1x1x64xf32> -> vector<1x1x64xf32>
    "tpu.trace_stop"() : () -> ()
    %15 = vector.shape_cast %14 : vector<1x1x64xf32> to vector<1x64xf32>
    %16 = vector.broadcast %5 : vector<1x1xf32> to vector<1x64xf32>
    %17 = arith.mulf %15, %16 : vector<1x64xf32>
    %c0_6 = arith.constant 0 : index
    %c0_7 = arith.constant 0 : index
    %18 = vector.load %arg3[%c0_6, %c0_7] : memref<64x4xf32, #tpu.memory_space<vmem>>, vector<64x4xf32>
    %cst_8 = arith.constant dense<0.000000e+00> : vector<1x4xf32>
    %19 = tpu.matmul %17, %18, %cst_8 {dimension_numbers = #tpu.dot_dimension_numbers<[1], [0], [0], [1], [0, 0, 1, 1], [], []>} : vector<1x64xf32>, vector<64x4xf32>, vector<1x4xf32> -> vector<1x4xf32>
    %cst_9 = arith.constant 0.000000e+00 : f32
    %20 = vector.broadcast %cst_9 : f32 to vector<1x4xf32>
    %21 = arith.maximumf %19, %20 : vector<1x4xf32>
    %c0_10 = arith.constant 0 : index
    %c0_11 = arith.constant 0 : index
    %22 = vector.load %arg4[%c0_10, %c0_11] : memref<4x64xf32, #tpu.memory_space<vmem>>, vector<4x64xf32>
    %cst_12 = arith.constant dense<0.000000e+00> : vector<1x64xf32>
    %23 = tpu.matmul %21, %22, %cst_12 {dimension_numbers = #tpu.dot_dimension_numbers<[1], [0], [0], [1], [0, 0, 1, 1], [], []>} : vector<1x4xf32>, vector<4x64xf32>, vector<1x64xf32> -> vector<1x64xf32>
    %24 = arith.negf %23 : vector<1x64xf32>
    %25 = math.exp %24 : vector<1x64xf32>
    %cst_13 = arith.constant 1.000000e+00 : f32
    %26 = vector.broadcast %cst_13 : f32 to vector<1x64xf32>
    %27 = arith.addf %26, %25 : vector<1x64xf32>
    %28 = arith.divf %26, %27 : vector<1x64xf32>
    %c0_14 = arith.constant 0 : index
    %c0_15 = arith.constant 0 : index
    %c0_16 = arith.constant 0 : index
    %29 = vector.load %arg2[%c0_14, %c0_15, %c0_16] : memref<1x64x128xf32, #tpu.memory_space<vmem>>, vector<1x64x128xf32>
    %30 = vector.shape_cast %28 : vector<1x64xf32> to vector<1x64x1xf32>
    %31 = vector.broadcast %30 : vector<1x64x1xf32> to vector<1x64x128xf32>
    %32 = arith.mulf %29, %31 : vector<1x64x128xf32>
    %c0_17 = arith.constant 0 : index
    %c0_18 = arith.constant 0 : index
    %c0_19 = arith.constant 0 : index
    %33 = vector.load %arg5[%c0_17, %c0_18, %c0_19] : memref<1x64x128xf32, #tpu.memory_space<vmem>>, vector<1x64x128xf32>
    tpu.vector_store %arg5[%c0_17, %c0_18, %c0_19], %32 {strides = array<i32>} : memref<1x64x128xf32, #tpu.memory_space<vmem>>, vector<1x64x128xf32>,
    return
  }
  func.func @transform_0(%arg0: i32) -> (i32, i32) {
    %c0_i32 = arith.constant 0 : i32
    %c0_i32_0 = arith.constant 0 : i32
    %c0_i32_1 = arith.constant 0 : i32
    return %c0_i32, %c0_i32_0 : i32, i32
  }
  func.func @transform_1(%arg0: i32) -> (i32, i32, i32) {
    %c0_i32 = arith.constant 0 : i32
    %c0_i32_0 = arith.constant 0 : i32
    %c0_i32_1 = arith.constant 0 : i32
    return %arg0, %c0_i32, %c0_i32_0 : i32, i32, i32
  }
  func.func @transform_2(%arg0: i32) -> (i32, i32) {
    %c0_i32 = arith.constant 0 : i32
    %c0_i32_0 = arith.constant 0 : i32
    %c0_i32_1 = arith.constant 0 : i32
    return %c0_i32, %c0_i32_0 : i32, i32
  }
  func.func @transform_3(%arg0: i32) -> (i32, i32) {
    %c0_i32 = arith.constant 0 : i32
    %c0_i32_0 = arith.constant 0 : i32
    %c0_i32_1 = arith.constant 0 : i32
    return %c0_i32, %c0_i32_0 : i32, i32
  }
  func.func @transform_4(%arg0: i32) -> (i32, i32, i32) {
    %c0_i32 = arith.constant 0 : i32
    %c0_i32_0 = arith.constant 0 : i32
    %c0_i32_1 = arith.constant 0 : i32
    return %arg0, %c0_i32, %c0_i32_0 : i32, i32, i32
  }
}

</mosaic_0001>

<bundles_post_ra>
// kernel: tpu_custom_call.1
= control target key start
LH: loop header
LB: loop body
LE: loop exit
PB: predicated region body
PF: predicated region fallthrough
CT: control target
= control target key end

     0   :  { %9 = vsyncpa [#allocation3], 0  ;;  %s1151_s0 = inlined_call_operand.vmem [shape: s32[2,1], index: 0, kind: input, shape index: {}]   ;;  %s1152_s1 = inlined_call_operand.hbm [shape: f32[2,64,128], index: 1, kind: input, shape index: {}]   ;;  %s1153_s2 = inlined_call_operand.vmem [shape: f32[64,4], index: 2, kind: input, shape index: {}]   ;;  %s1154_s3 = inlined_call_operand.vmem [shape: f32[4,64], index: 3, kind: input, shape index: {}]   ;;  %s1155_s4 = inlined_call_operand.hbm [shape: f32[2,64,128], index: 4, kind: output, shape index: {}]  }
   0x1   :  { %11 = vsyncpa [#allocation3 + $0x1], 0 }
   0x2   :  { %12 = vsyncpa [#allocation4], 0 }
   0x3   :  { %14 = vsyncpa [#allocation4 + $0x1], 0  ;;  %s901_s15 = smov 0   ;;  %s903_s16 = smov 0  }
   0x4   :  { %s905_s17 = smov 0   ;;  %s907_s18 = smov 0  }
   0x5 LB: > { %s922_s19 = sadd.s32 4294967295, %s864_s18   ;;  %s627_s20 = sadd.s32 4294967294, %s864_s18   ;;  %s864_s18 = sphi %s907_s18, %s1170_s18   ;;  %s860_s17 = sphi %s905_s17, %s1169_s17   ;;  %s856_s16 = sphi %s903_s16, %s1168_s16   ;;  %s852_s15 = sphi %s901_s15, %s1167_s15  }
   0x6   : > { %s926_s21 = sadd.s32 1, %s864_s18   ;;  %s48_s22 = sadd.s32 1, %s860_s17 }
   0x7   : > { %s45_s23 = ssub.s32 %s864_s18, %s926_s21  ;;  %p55_p0 = scmp.ne.s32.totalorder %s860_s17, %s856_s16 }
   0x8   : > { %p46_p1 = scmp.eq.s32.totalorder %s45_s23, 0  ;;  %p56_p2 = scmp.eq.s32.totalorder %s864_s18, 0 }
   0x9   : > { %p61_p3 = scmp.ne.s32.totalorder %s856_s16, %s852_s15  ;;  %p62_p4 = scmp.eq.s32.totalorder %s922_s19, 0 }
   0xa   : > { %s938_s24 = scalar_select %p46_p1, %s860_s17, %s48_s22  }
   0xb   : > { %p940_p5 = por %p56_p2, %p55_p0  ;;  %p944_p6 = por %p62_p4, %p61_p3 }
   0xc   : > { %p127_p7 = scmp.eq.s32.totalorder %s922_s19, 1  ;;  %p133_p8 = scmp.eq.s32.totalorder %s627_s20, 1 }
   0xd   : > { %s1159_s26 = scalar_select %p944_p6, 1, 0 }
   0xe   : > { %p723_p10 = scmp.lt.s32.totalorder %s864_s18, 2  ;;  %p951_p11 = por %p127_p7, %p55_p0 }
   0xf   : > { %p955_p12 = por %p133_p8, %p61_p3  ;;  %s162_s29 = sand.u32 1, %s860_s17  }
  0x10   : > { %s1160_s27 = scalar_select %p951_p11, 1, 0 }
  0x11   : > { %s1161_s28 = scalar_select %p955_p12, 1, 0 }
  0x12   : > { %s646_s30 = sshll.u32 %s864_s18, 10  ;;  %s630_s5 = sshll.u32 %s162_s29, 6 }
  0x13   : > { %s964_s8 = scalar_lea.hbm %s1152_s1, %s646_s30  ;;  %s166_s9 = scalar_lea.vmem [#allocation2], %s630_s5 }
  0x14   : > { %s173_s10 = sshll.u32 %s166_s9, 4  ;;  %p968_p13 = pnand %p723_p10, %p940_p5  ;;  %s972_s10 = int_to_ptr.vmem [resolvable:$true] %s173_s10 }
  0x15   : > { %s974_s12 = scalar_lea.sflag [#allocation3], %s162_s29  ;;  %s772_s13 = scalar_lea.hbm %s964_s8, 1024 }
  0x16   : > { %p773_p0 = scmp.ne.s32.totalorder %s964_s8, %s772_s13  ;;  %p774_p1 = pneg %p968_p13 }
  0x17   : > { %s777_s22 = scalar_lea.hbm %s1152_s1, 2048  ;;  %p778_p4 = scmp.lt.s32.totalorder %s964_s8, %s1152_s1 }
  0x18   : > { %p775_p2 = pnand %p774_p1, %p773_p0  ;;  %p779_p5 = scmp.lt.s32.totalorder %s777_s22, %s772_s13 }
  0x1a   : > { %p776_p3 = pneg %p775_p2  ;;  %p780_p7 = por %p779_p5, %p778_p4 }
  0x1c   : > { %p781_p8 = pnand %p780_p7, %p776_p3 }
  0x1e   : > { %784 = shalt.err (!%p781_p8)
}
  0x1f   : > { %s785_s29 = scalar_lea.vmem %s972_s10, 1024  ;;  %s866_s30 = smov [#allocation2]  }
  0x20   : > { %p786_p10 = scmp.ne.s32.totalorder %s972_s10, %s785_s29  ;;  %s790_s5 = sshll.u32 %s866_s30, 4  ;;  %s791_s5 = int_to_ptr.vmem [resolvable:$false] %s790_s5 }
  0x21   : > { %s792_s6 = scalar_lea.vmem %s791_s5, 2048  ;;  %p793_p2 = scmp.lt.s32.totalorder %s972_s10, %s791_s5 }
  0x22   : > { %p788_p9 = pnand %p786_p10, %p774_p1  ;;  %p794_p12 = scmp.lt.s32.totalorder %s792_s6, %s785_s29 }
  0x24   : > { %p789_p0 = pneg %p788_p9  ;;  %p795_p11 = por %p794_p12, %p793_p2 }
  0x26   : > { %p796_p6 = pnand %p795_p11, %p789_p0 }
  0x28   : > { %799 = shalt.err (!%p796_p6)
}
  0x29   : > { %s867_s7 = smov 128   ;;  %s868_s9 = smov 8  }
  0x2a   : > { %718 = dma.hbm_to_vmem [thread:$0]  (!%p968_p13), %s964_s8, 1024, %s972_s10, %s974_s12, %s867_s7, %s867_s7, %s868_s9  }
  0x2b   : > { %p633_p9 = scmp.ge.s32.totalorder %s864_s18, 1  ;;  %p181_p1 = scmp.lt.s32.totalorder %s864_s18, 3 }
  0x2d   : > { %p182_p3 = pnand %p633_p9, %p181_p1 }
  0x2e   : > { %s998_s13 = sand.u32 (!%p182_p3), 1, %s856_s16   ;;  %p1163_p6 = scmp.ne.s32.totalorder (!%p182_p3), %s1159_s26, 0 }
  0x2f   : > { %185 = sbr.rel (%p182_p3) target bundleno = 945 (0x3b1), region = 36  ;;  %s634_s14 = sshll.u32 (!%p182_p3), %s998_s13, 6 }
  0x30   : > { %s188_s20 = scalar_lea.sflag (!%p182_p3), [#allocation3], %s998_s13  ;;  %s1004_s22 = scalar_lea.vmem (!%p182_p3), [#allocation2], %s634_s14 }
  0x34   : > { %843 = dma.done.wait (%p1163_p6), %s188_s20, 1024  }
  0x35   : > { %845 = vsyncadd (%p1163_p6), %s188_s20, 4294966272  ;;  %v869_v0 = vmov 0   ;;  %v870_v1 = vmov 0.0   ;;  %s216_s11 = scalar_lea.vmem %s1151_s0, %s922_s19  ;;  %vm871_vm0 = vmmov 0   ;;  %v1021_v3 = vld [vmem:[%s1004_s22 + $0x38] sm:$0xff]  ;;  %v1026_v5 = vld [vmem:[%s1004_s22 + $0x30] sm:$0xff]  ;;  %v221_v19 = vlaneseq }
  0x36   : > { %765 = vset.pattern.permute.xlu0 %v869_v0  ;;  %668 = vmatprep.subr.mxu0 %v870_v1  ;;  %v217_v2 = vld [vmem:[%s216_s11] sm:$0x1]  ;;  %v1031_v6 = vld [vmem:[%s1004_s22 + $0x28] sm:$0xff]  ;;  %v319_v8 = vld [vmem:[%s1153_s2 + $0x38] sm:$0xff]  ;;  %v872_v22 = vmov 1.0   ;;  %vm320_vm2 = vcmask 523264  }
  0x37   : > { %687 = vmatprep.subr.mxu1 %v870_v1  ;;  %684 = vmatprep.mubr.msk.f32.mxu0 %vm871_vm0, %v870_v1  ;;  %v218_v4 = vcvt.s32.f32 %v217_v2  ;;  %v1036_v7 = vld [vmem:[%s1004_s22 + $0x20] sm:$0xff]  ;;  %v318_v9 = vld [vmem:[%s1153_s2 + $0x30] sm:$0xff]  ;;  %v1047_v10 = vld [vmem:[%s1004_s22 + $0x18] sm:$0xff]  ;;  %v222_v20 = vand.u32 127, %v221_v19  ;;  %vm400_vm3 = vcmask 1043456   ;;  %vm396_vm4 = vcmask 31744  }
  0x38   : > { %703 = vmatprep.mubr.msk.f32.mxu1 %vm871_vm0, %v870_v1  ;;  %224 = vperm.xlu0 %765, %v217_v2   ;;  %v317_v11 = vld [vmem:[%s1153_s2 + $0x28] sm:$0xff]  ;;  %v316_v13 = vld [vmem:[%s1153_s2 + $0x20] sm:$0xff]  ;;  %v1060_v14 = vld [vmem:[%s1004_s22 + $0x10] sm:$0xff]  ;;  %v489_v38 = vshrl.u32 %v221_v19, 7  ;;  %s215_s25 = scalar_lea.vmem [#allocation5], %s634_s14  ;;  %s647_s29 = sshll.u32 %s922_s19, 10 }
  0x39   : > { %669 = vmatpush3.xpose.msra.mxu0 %v1021_v3  ;;  %766 = vrcp.f32 %v218_v4  ;;  %688 = vmatpush3.msra.mxu1 %v319_v8  ;;  %v315_v15 = vld [vmem:[%s1153_s2 + $0x18] sm:$0xff]  ;;  %v314_v16 = vld [vmem:[%s1153_s2 + $0x10] sm:$0xff]  ;;  %v1073_v17 = vld [vmem:[%s1004_s22 + $0x8] sm:$0xff]  ;;  %s553_s14 = sshll.u32 %s215_s25, 4  ;;  %s1107_s6 = scalar_lea.hbm %s1155_s4, %s647_s29  ;;  %s1102_s14 = int_to_ptr.vmem [resolvable:$true] %s553_s14 }
  0x3a   : > { %670 = vmatprep.subr.mxu0 %v870_v1  ;;  %689 = vmatprep.subr.mxu1 %v870_v1  ;;  %v228_v18 = vld [vmem:[%s1004_s22] sm:$0xff]  ;;  %v313_v23 = vld [vmem:[%s1153_s2 + $0x8] sm:$0xff]  ;;  %v490_v39 = vsub.s32 0, %v489_v38  ;;  %s540_s7 = scalar_lea.sflag [#allocation4], %s998_s13  ;;  %s800_s9 = scalar_lea.vmem %s1102_s14, 1024 }
  0x3b   : > { %690 = vmatpush3.msra.mxu1 %v318_v9  ;;  %v312_v24 = vld [vmem:[%s1153_s2] sm:$0xff]  ;;  %p801_p11 = scmp.ne.s32.totalorder %s1102_s14, %s800_s9  ;;  %p1164_p12 = scmp.ne.s32.totalorder %s1160_s27, 0 }
  0x3c   : > { %691 = vmatprep.subr.mxu1 %v870_v1  ;;  %v395_v28 = vld [vmem:[%s1154_s3] sm:$0xf]  ;;  %s873_s19 = smov [#allocation5]  }
  0x3d   : > { %671 = vmatpush3.xpose.msra.mxu0 %v1026_v5  ;;  %692 = vmatpush3.msra.mxu1 %v317_v11  ;;  %p802_p13 = pnand %p801_p11, %p1164_p12  ;;  %s804_s20 = sshll.u32 %s873_s19, 4  ;;  %s805_s20 = int_to_ptr.vmem [resolvable:$false] %s804_s20 }
  0x3e   : > { %672 = vmatprep.subr.mxu0 %v870_v1  ;;  %693 = vmatprep.subr.mxu1 %v870_v1  ;;  %s806_s8 = scalar_lea.vmem %s805_s20, 2048  ;;  %p807_p5 = scmp.lt.s32.totalorder %s1102_s14, %s805_s20 }
  0x3f   : > { %694 = vmatpush3.msra.mxu1 %v316_v13  ;;  %p803_p4 = pneg %p802_p13  ;;  %p808_p7 = scmp.lt.s32.totalorder %s806_s8, %s800_s9 }
  0x40   : > { %695 = vmatprep.subr.mxu1 %v870_v1 }
  0x41   : > { %673 = vmatpush3.xpose.msra.mxu0 %v1031_v6  ;;  %696 = vmatpush3.msra.mxu1 %v315_v15  ;;  %p809_p8 = por %p808_p7, %p807_p5 }
  0x42   : > { %674 = vmatprep.subr.mxu0 %v870_v1  ;;  %697 = vmatprep.subr.mxu1 %v870_v1 }
  0x43   : > { %698 = vmatpush3.msra.mxu1 %v314_v16  ;;  %p810_p10 = pnand %p809_p8, %p803_p4 }
  0x44   : > { %699 = vmatprep.subr.mxu1 %v870_v1 }
  0x45   : > { %675 = vmatpush3.xpose.msra.mxu0 %v1036_v7  ;;  %700 = vmatpush3.msra.mxu1 %v313_v23 }
  0x46   : > { %676 = vmatprep.subr.mxu0 %v870_v1  ;;  %v767_v12 = vpop.eup %766  ;;  %701 = vmatprep.subr.mxu1 %v870_v1 }
  0x47   : > { %308 = vperm.xlu0 %765, %v767_v12   ;;  %702 = vmatpush3.msra.mxu1 %v312_v24 }
  0x48   : > { %706 = vmatprep.subr.mxu1 %v870_v1 }
  0x49   : > { %677 = vmatpush3.xpose.msra.mxu0 %v1047_v10 }
  0x4a   : > { %678 = vmatprep.subr.mxu0 %v870_v1 }
  0x4d   : > { %679 = vmatpush3.xpose.msra.mxu0 %v1060_v14 }
  0x4e   : > { %680 = vmatprep.subr.mxu0 %v870_v1 }
  0x51   : > { %681 = vmatpush3.xpose.msra.mxu0 %v1073_v17 }
  0x52   : > { %682 = vmatprep.subr.mxu0 %v870_v1 }
  0x55   : > { %683 = vmatpush3.xpose.msra.mxu0 %v228_v18 }
  0xb3   : > { %v225_v21 = vpop.permute.xlu0 %224 }
  0xb4   : > { %vm226_vm1 = vcmp.lt.s32.totalorder %v222_v20, %v225_v21 }
  0xb5   : > { %685 = vmatmul.mubr.msk.f32.vlgmr.msra.gmra.mxu0 %vm226_vm1, %v872_v22 }
  0xc2   : > { %v309_v25 = vpop.permute.xlu0 %308 }
 0x175   : > { %v302_v26 = vpop.f32.mrf.mxu0 }
 0x176   : > { %v311_v27 = vmul.f32 %v309_v25, %v302_v26 }
 0x177   : > { %v686_v29 = vpop.f32.mrf.mxu0 }
 0x178   : > { %704 = vmatmul.mubr.msk.f32.vlgmr.msra.gmra.mxu1 %vm320_vm2, %v311_v27 }
 0x179   : > { %707 = vmatpush3.msk.msra.mxu1 %vm400_vm3, %v395_v28  ;;  %708 = vmatprep.mubr.msk.f32.mxu1 %vm871_vm0, %v870_v1 }
 0x238   : > { %v390_v30 = vpop.f32.mrf.mxu1 }
 0x239   : > { %v394_v31 = vmax.f32 %v390_v30, 0.0 }
 0x23a   : > { %v705_v32 = vpop.f32.mrf.mxu1 }
 0x23b   : > { %709 = vmatmul.mubr.msk.f32.vlgmr.msra.gmra.mxu1 %vm396_vm4, %v394_v31 }
 0x2fb   : > { %v470_v33 = vpop.f32.mrf.mxu1 }
 0x2fc   : > { %v640_v34 = vmul.f32 -1.442695, %v470_v33 }
 0x2fd   : > { %v710_v35 = vpop.f32.mrf.mxu1 }
 0x2fe   : > { %768 = vpow2.f32 %v640_v34 }
 0x30b   : > { %v769_v36 = vpop.eup %768 }
 0x30c   : > { %v477_v37 = vadd.f32 1.0, %v769_v36 }
 0x30e   : > { %770 = vrcp.f32 %v477_v37 }
 0x31b   : > { %v771_v40 = vpop.eup %770 }
 0x31c   : > { %v491_v41 = vrot.slane %v771_v40, %v490_v39 }
 0x31e   : > { %501 = vbcast.lane.b32.xlu0 %v491_v41, 272  ;;  %493 = vbcast.lane.b32.xlu1 %v491_v41, 256 }
 0x322   : > { %509 = vbcast.lane.b32.xlu0 %v491_v41, 288  ;;  %497 = vbcast.lane.b32.xlu1 %v491_v41, 264 }
 0x326   : > { %517 = vbcast.lane.b32.xlu0 %v491_v41, 304  ;;  %505 = vbcast.lane.b32.xlu1 %v491_v41, 280 }
 0x32a   : > { %513 = vbcast.lane.b32.xlu1 %v491_v41, 296 }
 0x32e   : > { %521 = vbcast.lane.b32.xlu1 %v491_v41, 312 }
 0x390   : > { %v502_v42 = vpop.permute.xlu0 %501  ;;  %v494_v43 = vpop.permute.xlu1 %493 }
 0x391   : > { %v525_v44 = vmul.f32 %v502_v42, %v1060_v14  ;;  %v523_v45 = vmul.f32 %v494_v43, %v228_v18 }
 0x393   : > { %533 = vst [vmem:[%s215_s25 + $0x10] sm:$0xff] %v525_v44  ;;  %531 = vst [vmem:[%s215_s25] sm:$0xff] %v523_v45 }
 0x394   : > { %v510_v46 = vpop.permute.xlu0 %509  ;;  %v498_v47 = vpop.permute.xlu1 %497 }
 0x395   : > { %v527_v48 = vmul.f32 %v510_v46, %v1036_v7  ;;  %v524_v49 = vmul.f32 %v498_v47, %v1073_v17 }
 0x397   : > { %535 = vst [vmem:[%s215_s25 + $0x20] sm:$0xff] %v527_v48  ;;  %532 = vst [vmem:[%s215_s25 + $0x8] sm:$0xff] %v524_v49 }
 0x398   : > { %v518_v50 = vpop.permute.xlu0 %517  ;;  %v506_v51 = vpop.permute.xlu1 %505 }
 0x399   : > { %v529_v52 = vmul.f32 %v518_v50, %v1026_v5  ;;  %v526_v53 = vmul.f32 %v506_v51, %v1047_v10 }
 0x39b   : > { %537 = vst [vmem:[%s215_s25 + $0x30] sm:$0xff] %v529_v52  ;;  %534 = vst [vmem:[%s215_s25 + $0x18] sm:$0xff] %v526_v53 }
 0x39c   : > { %v514_v54 = vpop.permute.xlu1 %513 }
 0x39d   : > { %v528_v55 = vmul.f32 %v514_v54, %v1031_v6 }
 0x39f   : > { %536 = vst [vmem:[%s215_s25 + $0x28] sm:$0xff] %v528_v55 }
 0x3a0   : > { %v522_v56 = vpop.permute.xlu1 %521 }
 0x3a1   : > { %v530_v57 = vmul.f32 %v522_v56, %v1021_v3 }
 0x3a3   : > { %538 = vst [vmem:[%s215_s25 + $0x38] sm:$0xff] %v530_v57 }
 0x3a4   : > { %813 = shalt.err (!%p810_p10)
}
 0x3a5   : > { %s814_s10 = scalar_lea.hbm %s1107_s6, 1024  ;;  %s818_s12 = scalar_lea.hbm %s1155_s4, 2048 }
 0x3a6   : > { %p815_p0 = scmp.ne.s32.totalorder %s1107_s6, %s814_s10  ;;  %p819_p1 = scmp.lt.s32.totalorder %s1107_s6, %s1155_s4 }
 0x3a7   : > { %p820_p3 = scmp.lt.s32.totalorder %s818_s12, %s814_s10 }
 0x3a8   : > { %p816_p2 = pnand %p815_p0, %p1164_p12 }
 0x3a9   : > { %p821_p6 = por %p820_p3, %p819_p1 }
 0x3aa   : > { %p817_p9 = pneg %p816_p2 }
 0x3ac   : > { %p822_p11 = pnand %p821_p6, %p817_p9 }
 0x3ae   : > { %825 = shalt.err (!%p822_p11)
}
 0x3af   : > { %s874_s25 = smov 128   ;;  %s875_s29 = smov 8  }
 0x3b0   : > { %713 = dma.vmem_to_hbm [thread:$0]  (%p1164_p12), %s1102_s14, 1024, %s1107_s6, %s540_s7, %s874_s25, %s874_s25, %s875_s29  }
 0x3b1 PF: > { %s568_s30 = sand.u32 1, %s852_s15   ;;  %p1165_p13 = scmp.ne.s32.totalorder %s1161_s28, 0 }
 0x3b2   : > { %p1166_p4 = scmp.ge.s32.totalorder %s864_s18, 2  ;;  %s569_s5 = scalar_lea.sflag [#allocation4], %s568_s30 }
 0x3b4   : > { %p720_p5 = pnand %p1166_p4, %p1165_p13 }
 0x3b6   : > { %p721_p7 = pneg %p720_p5 }
 0x3b8   : > { %847 = dma.done.wait (%p721_p7), %s569_s5, 1024  }
 0x3b9   : > { %849 = vsyncadd (%p721_p7), %s569_s5, 4294966272  ;;  %p17_p8 = scmp.ge.s32.totalorder %s926_s21, 4   ;;  %s1167_s15 = smov %s856_s16 }
 0x3ba   : > { %s1168_s16 = smov %s860_s17  ;;  %s1169_s17 = smov %s938_s24 }
 0x3bb   : > { %s1170_s18 = smov %s926_s21  ;;  %19 = sbr.rel (!%p17_p8) target bundleno = 5 (0x5), region = 82 }
 0x3c0   :  { %574 = vsyncpa [#allocation3], 1 }
 0x3c1   :  { %576 = vsyncpa [#allocation3 + $0x1], 1 }
 0x3c2   :  { %577 = vsyncpa [#allocation4], 1 }
 0x3c3   :  { %579 = vsyncpa [#allocation4 + $0x1], 1 }

</bundles_post_ra>
